<compile_context>
chip_gen: v6e
topology: v6e:2x2x1
jax: 0.10.0
libtpu: 0.0.40
codegen_flags: <defaults>
</compile_context>

<pallas_src>
import jax
import jax.numpy as jnp
from jax.experimental import pallas as pl
from jax.experimental.pallas import tpu as pltpu


def policy_kernel(x_ref, w_ref, b_ref, out_ref):
    # x_ref:   (TN, C*F)  fused input tile (batch rows x flattened channel*spatial)
    # w_ref:   (C*F, 4)   fused conv+linear weight
    # b_ref:   (1, 4)     fused bias
    # out_ref: (TN, 4)    softmax probabilities
    logits = jnp.dot(x_ref[...], w_ref[...],
                     preferred_element_type=jnp.float32)          # MXU, f32 acc
    logits = logits + b_ref[...]                                  # broadcast (1, 4)

    # Softmax over the last axis (nn.Softmax picks dim=1 for a 2D input).
    m = jnp.max(logits, axis=-1, keepdims=True)
    e = jnp.exp(logits - m)
    denom = jnp.sum(e, axis=-1, keepdims=True)
    out_ref[...] = (e * pl.reciprocal(denom, approx=True)).astype(out_ref.dtype)


def policy_type_forward(x_nchw, w_conv, b_conv, w_lin, b_lin, block_n=512):
    """x_nchw: (N, C, H, W) float32.  Returns (N, 4) softmax probabilities.

    block_n: batch-tile size.  512 rows of f32 with C*F=1024 is ~2 MiB/buffer
    (x2 double-buffered), comfortably inside v7x's 64 MiB VMEM; on v5e/v6e
    (128 MiB VMEM) 1024-2048 rows amortizes per-step overhead even better.
    """
    N, C, H, W = x_nchw.shape
    F = H * W
    K = C * F
    assert w_lin.shape == (4, F), "feature_num must equal H*W"

    # ---- one-time wrapper-side fusion of conv1x1 into the linear layer ----
    w_c = w_conv.reshape(C)                                   # (C,)
    w2t = jnp.transpose(w_lin)                                # (F, 4)
    w_fused = (w_c[:, None, None] * w2t[None, :, :]).reshape(K, 4)   # (C*F, 4)
    b_fused = (b_lin + b_conv[0] * jnp.sum(w2t, axis=0)).reshape(1, 4)

    x2 = x_nchw.reshape(N, K)                                 # (N, C*F), lane-dense

    # ---- batch tiling (block second-to-last dim must be full N or mult. of 8) ----
    if N <= block_n:
        tn = N
        n_pad = N
    else:
        tn = block_n                                          # multiple of 8
        n_pad = pl.cdiv(N, tn) * tn
        if n_pad != N:
            x2 = jnp.pad(x2, ((0, n_pad - N), (0, 0)))        # padded rows discarded

    grid = (n_pad // tn,)

    out = pl.pallas_call(
        policy_kernel,
        out_shape=jax.ShapeDtypeStruct((n_pad, 4), jnp.float32),
        grid=grid,
        in_specs=[
            pl.BlockSpec((tn, K), lambda i: (i, 0)),          # streamed per batch tile
            pl.BlockSpec((K, 4), lambda i: (0, 0)),           # weights resident
            pl.BlockSpec((1, 4), lambda i: (0, 0)),           # bias resident
        ],
        out_specs=pl.BlockSpec((tn, 4), lambda i: (i, 0)),
        compiler_params=pltpu.CompilerParams(
            dimension_semantics=("parallel",)),               # 2 TCs on v7x
    )(x2, w_fused, b_fused)

    return out[:N]


if __name__ == "__main__":
    # Small shapes consistent with the module: batch=2, channels=4, spatial=16x16,
    # feature_num = 16*16 = 256.
    N, C, H, W = 2, 4, 16, 16
    F = H * W

    key = jax.random.PRNGKey(0)
    kx, kw1, kb1, kw2, kb2 = jax.random.split(key, 5)

    x = jax.random.normal(kx, (N, C, H, W), dtype=jnp.float32)

    # Deterministic synthetic parameters (same shapes as the nn.Module's params).
    w_conv = jax.random.normal(kw1, (1, C, 1, 1), dtype=jnp.float32) * 0.1
    b_conv = jax.random.normal(kb1, (1,), dtype=jnp.float32) * 0.1
    w_lin = jax.random.normal(kw2, (4, F), dtype=jnp.float32) * 0.05
    b_lin = jax.random.normal(kb2, (4,), dtype=jnp.float32) * 0.05

    out = policy_type_forward(x, w_conv, b_conv, w_lin, b_lin)
    out = jax.block_until_ready(out)

    # Pure-JAX reference check (tolerance loosened slightly for the EUP
    # approximate reciprocal used in the softmax denominator).
    conv_ref = jnp.einsum("nchw,c->nhw", x, w_conv[0, :, 0, 0]) + b_conv[0]
    flat_ref = conv_ref.reshape(N, F)
    logits_ref = flat_ref @ w_lin.T + b_lin
    probs_ref = jax.nn.softmax(logits_ref, axis=-1)
    assert out.shape == (N, 4)
    assert jnp.allclose(out, probs_ref, atol=1e-3, rtol=1e-3)
    assert jnp.allclose(jnp.sum(out, axis=-1), 1.0, atol=1e-3)

    print("KERNEL_OK")
</pallas_src>

<mosaic_0001>
module attributes {stable_mosaic.version = 11 : i64} {
  func.func @policy_kernel(%arg0: i32, %arg1: memref<2x1024xf32, #tpu.memory_space<vmem>>, %arg2: memref<1024x4xf32, #tpu.memory_space<vmem>>, %arg3: memref<1x4xf32, #tpu.memory_space<vmem>>, %arg4: memref<2x4xf32, #tpu.memory_space<vmem>>) attributes {dimension_semantics = [#tpu.dimension_semantics<parallel>], iteration_bounds = array<i64: 1>, scalar_prefetch = 0 : i64, scratch_operands = 0 : i64, tpu.core_type = #tpu.core_type<tc>, window_params = [{transform_indices = @transform_0, window_bounds = array<i64: 2, 1024>}, {pipeline_mode = #tpu.pipeline_mode<synchronous>, transform_indices = @transform_1, window_bounds = array<i64: 1024, 4>}, {pipeline_mode = #tpu.pipeline_mode<synchronous>, transform_indices = @transform_2, window_bounds = array<i64: 1, 4>}, {transform_indices = @transform_3, window_bounds = array<i64: 2, 4>}]} {
    %c0 = arith.constant 0 : index
    %c0_0 = arith.constant 0 : index
    %0 = vector.load %arg1[%c0, %c0_0] : memref<2x1024xf32, #tpu.memory_space<vmem>>, vector<2x1024xf32>
    %c0_1 = arith.constant 0 : index
    %c0_2 = arith.constant 0 : index
    %1 = vector.load %arg2[%c0_1, %c0_2] : memref<1024x4xf32, #tpu.memory_space<vmem>>, vector<1024x4xf32>
    %cst = arith.constant dense<0.000000e+00> : vector<2x4xf32>
    %2 = tpu.matmul %0, %1, %cst {dimension_numbers = #tpu.dot_dimension_numbers<[1], [0], [0], [1], [0, 0, 1, 1], [], []>} : vector<2x1024xf32>, vector<1024x4xf32>, vector<2x4xf32> -> vector<2x4xf32>
    %c0_3 = arith.constant 0 : index
    %c0_4 = arith.constant 0 : index
    %3 = vector.load %arg3[%c0_3, %c0_4] : memref<1x4xf32, #tpu.memory_space<vmem>>, vector<1x4xf32>
    %4 = vector.broadcast %3 : vector<1x4xf32> to vector<2x4xf32>
    %5 = arith.addf %2, %4 : vector<2x4xf32>
    %cst_5 = arith.constant dense<0xFF800000> : vector<2xf32>
    %6 = vector.multi_reduction <maximumf>, %5, %cst_5 [1] : vector<2x4xf32> to vector<2xf32>
    %7 = vector.shape_cast %6 : vector<2xf32> to vector<2x1xf32>
    %8 = vector.broadcast %7 : vector<2x1xf32> to vector<2x4xf32>
    %9 = arith.subf %5, %8 : vector<2x4xf32>
    %10 = math.exp %9 : vector<2x4xf32>
    %cst_6 = arith.constant dense<0.000000e+00> : vector<2xf32>
    %11 = vector.multi_reduction <add>, %10, %cst_6 [1] : vector<2x4xf32> to vector<2xf32>
    %12 = vector.shape_cast %11 : vector<2xf32> to vector<2x1xf32>
    %13 = tpu.reciprocal %12 {approx = true} : vector<2x1xf32> -> vector<2x1xf32>
    %14 = vector.broadcast %13 : vector<2x1xf32> to vector<2x4xf32>
    %15 = arith.mulf %10, %14 : vector<2x4xf32>
    %c0_7 = arith.constant 0 : index
    %c0_8 = arith.constant 0 : index
    %16 = vector.load %arg4[%c0_7, %c0_8] : memref<2x4xf32, #tpu.memory_space<vmem>>, vector<2x4xf32>
    tpu.vector_store %arg4[%c0_7, %c0_8], %15 {strides = array<i32>} : memref<2x4xf32, #tpu.memory_space<vmem>>, vector<2x4xf32>,
    return
  }
  func.func @transform_0(%arg0: i32) -> (i32, i32) {
    %c0_i32 = arith.constant 0 : i32
    %c0_i32_0 = arith.constant 0 : i32
    return %arg0, %c0_i32 : i32, i32
  }
  func.func @transform_1(%arg0: i32) -> (i32, i32) {
    %c0_i32 = arith.constant 0 : i32
    %c0_i32_0 = arith.constant 0 : i32
    %c0_i32_1 = arith.constant 0 : i32
    return %c0_i32, %c0_i32_0 : i32, i32
  }
  func.func @transform_2(%arg0: i32) -> (i32, i32) {
    %c0_i32 = arith.constant 0 : i32
    %c0_i32_0 = arith.constant 0 : i32
    %c0_i32_1 = arith.constant 0 : i32
    return %c0_i32, %c0_i32_0 : i32, i32
  }
  func.func @transform_3(%arg0: i32) -> (i32, i32) {
    %c0_i32 = arith.constant 0 : i32
    %c0_i32_0 = arith.constant 0 : i32
    return %arg0, %c0_i32 : i32, i32
  }
}

</mosaic_0001>

<bundles_post_ra>
// kernel: tpu_custom_call.1
= control target key start
LH: loop header
LB: loop body
LE: loop exit
PB: predicated region body
PF: predicated region fallthrough
CT: control target
= control target key end

     0   :  { %v674_v30 = vmov 1983009808   ;;  %v158_v32 = vlaneseq  ;;  %s1101_s0 = inlined_call_operand.vmem [shape: f32[2,1024], index: 0, kind: input, shape index: {}]   ;;  %s1102_s1 = inlined_call_operand.vmem [shape: f32[1024,4], index: 1, kind: input, shape index: {}]   ;;  %s1103_s2 = inlined_call_operand.vmem [shape: f32[1,4], index: 2, kind: input, shape index: {}]   ;;  %s1104_s3 = inlined_call_operand.hbm [shape: f32[2,4], index: 3, kind: output, shape index: {}]  }
   0x1   :  { %v48_v0 = vld [vmem:[%s1102_s1 + $0xf8] sm:$0xff]  ;;  %v47_v4 = vld [vmem:[%s1102_s1 + $0xf0] sm:$0xff]  ;;  %v46_v8 = vld [vmem:[%s1102_s1 + $0xe8] sm:$0xff]  ;;  %v156_v31 = vunpack.c.l.s4 %v674_v30 }
   0x2   :  { %v80_v1 = vld [vmem:[%s1102_s1 + $0x1f8] sm:$0xff]  ;;  %504 = vmatprep.subr.mxu0 %v48_v0  ;;  %v79_v5 = vld [vmem:[%s1102_s1 + $0x1f0] sm:$0xff]  ;;  %v78_v9 = vld [vmem:[%s1102_s1 + $0x1e8] sm:$0xff]  ;;  %v159_v42 = vshrl.u32 %v158_v32, 7 }
   0x3   :  { %v32_v2 = vld [vmem:[%s1102_s1 + $0x78] sm:$0xff]  ;;  %539 = vmatprep.subr.mxu1 %v80_v1  ;;  %v31_v6 = vld [vmem:[%s1102_s1 + $0x70] sm:$0xff]  ;;  %v30_v10 = vld [vmem:[%s1102_s1 + $0x68] sm:$0xff]  ;;  %v157_v41 = vunpack.c.0.s8 %v156_v31 }
   0x4   :  { %v64_v3 = vld [vmem:[%s1102_s1 + $0x178] sm:$0xff]  ;;  %505 = vmatpush3.msra.mxu0 %v32_v2  ;;  %v63_v7 = vld [vmem:[%s1102_s1 + $0x170] sm:$0xff]  ;;  %v62_v11 = vld [vmem:[%s1102_s1 + $0x168] sm:$0xff] }
   0x5   :  { %540 = vmatpush3.msra.mxu1 %v64_v3  ;;  %506 = vmatprep.subr.mxu0 %v47_v4  ;;  %v45_v12 = vld [vmem:[%s1102_s1 + $0xe0] sm:$0xff]  ;;  %v44_v16 = vld [vmem:[%s1102_s1 + $0xd8] sm:$0xff]  ;;  %v43_v20 = vld [vmem:[%s1102_s1 + $0xd0] sm:$0xff]  ;;  %v834_v51 = vsub.s32 %v157_v41, %v159_v42 }
   0x6   :  { %541 = vmatprep.subr.mxu1 %v79_v5  ;;  %507 = vmatpush3.msra.mxu0 %v31_v6  ;;  %v77_v13 = vld [vmem:[%s1102_s1 + $0x1e0] sm:$0xff]  ;;  %v76_v17 = vld [vmem:[%s1102_s1 + $0x1d8] sm:$0xff]  ;;  %v75_v21 = vld [vmem:[%s1102_s1 + $0x1d0] sm:$0xff] }
   0x7   :  { %542 = vmatpush3.msra.mxu1 %v63_v7  ;;  %508 = vmatprep.subr.mxu0 %v46_v8  ;;  %v29_v14 = vld [vmem:[%s1102_s1 + $0x60] sm:$0xff]  ;;  %v28_v18 = vld [vmem:[%s1102_s1 + $0x58] sm:$0xff]  ;;  %v27_v22 = vld [vmem:[%s1102_s1 + $0x50] sm:$0xff] }
   0x8   :  { %543 = vmatprep.subr.mxu1 %v78_v9  ;;  %v61_v15 = vld [vmem:[%s1102_s1 + $0x160] sm:$0xff]  ;;  %509 = vmatpush3.msra.mxu0 %v30_v10  ;;  %v60_v19 = vld [vmem:[%s1102_s1 + $0x158] sm:$0xff]  ;;  %v59_v23 = vld [vmem:[%s1102_s1 + $0x150] sm:$0xff] }
   0x9   :  { %544 = vmatpush3.msra.mxu1 %v62_v11  ;;  %510 = vmatprep.subr.mxu0 %v45_v12  ;;  %v42_v24 = vld [vmem:[%s1102_s1 + $0xc8] sm:$0xff]  ;;  %v41_v28 = vld [vmem:[%s1102_s1 + $0xc0] sm:$0xff]  ;;  %v40_v35 = vld [vmem:[%s1102_s1 + $0xb8] sm:$0xff] }
   0xa   :  { %545 = vmatprep.subr.mxu1 %v77_v13  ;;  %511 = vmatpush3.msra.mxu0 %v29_v14  ;;  %v74_v25 = vld [vmem:[%s1102_s1 + $0x1c8] sm:$0xff]  ;;  %v73_v29 = vld [vmem:[%s1102_s1 + $0x1c0] sm:$0xff]  ;;  %v72_v36 = vld [vmem:[%s1102_s1 + $0x1b8] sm:$0xff] }
   0xb   :  { %546 = vmatpush3.msra.mxu1 %v61_v15  ;;  %512 = vmatprep.subr.mxu0 %v44_v16  ;;  %v26_v26 = vld [vmem:[%s1102_s1 + $0x48] sm:$0xff]  ;;  %v25_v33 = vld [vmem:[%s1102_s1 + $0x40] sm:$0xff]  ;;  %v24_v37 = vld [vmem:[%s1102_s1 + $0x38] sm:$0xff] }
   0xc   :  { %547 = vmatprep.subr.mxu1 %v76_v17  ;;  %513 = vmatpush3.msra.mxu0 %v28_v18  ;;  %v58_v27 = vld [vmem:[%s1102_s1 + $0x148] sm:$0xff]  ;;  %v57_v34 = vld [vmem:[%s1102_s1 + $0x140] sm:$0xff]  ;;  %v56_v38 = vld [vmem:[%s1102_s1 + $0x138] sm:$0xff] }
   0xd   :  { %548 = vmatpush3.msra.mxu1 %v60_v19  ;;  %514 = vmatprep.subr.mxu0 %v43_v20  ;;  %v39_v39 = vld [vmem:[%s1102_s1 + $0xb0] sm:$0xff]  ;;  %v38_v45 = vld [vmem:[%s1102_s1 + $0xa8] sm:$0xff]  ;;  %v37_v49 = vld [vmem:[%s1102_s1 + $0xa0] sm:$0xff] }
   0xe   :  { %549 = vmatprep.subr.mxu1 %v75_v21  ;;  %515 = vmatpush3.msra.mxu0 %v27_v22  ;;  %v71_v40 = vld [vmem:[%s1102_s1 + $0x1b0] sm:$0xff]  ;;  %v70_v46 = vld [vmem:[%s1102_s1 + $0x1a8] sm:$0xff]  ;;  %v69_v50 = vld [vmem:[%s1102_s1 + $0x1a0] sm:$0xff] }
   0xf   :  { %550 = vmatpush3.msra.mxu1 %v59_v23  ;;  %516 = vmatprep.subr.mxu0 %v42_v24  ;;  %v23_v43 = vld [vmem:[%s1102_s1 + $0x30] sm:$0xff]  ;;  %v22_v47 = vld [vmem:[%s1102_s1 + $0x28] sm:$0xff]  ;;  %v21_v52 = vld [vmem:[%s1102_s1 + $0x20] sm:$0xff] }
  0x10   :  { %551 = vmatprep.subr.mxu1 %v74_v25  ;;  %517 = vmatpush3.msra.mxu0 %v26_v26  ;;  %v55_v44 = vld [vmem:[%s1102_s1 + $0x130] sm:$0xff]  ;;  %v54_v48 = vld [vmem:[%s1102_s1 + $0x128] sm:$0xff]  ;;  %v53_v53 = vld [vmem:[%s1102_s1 + $0x120] sm:$0xff] }
  0x11   :  { %552 = vmatpush3.msra.mxu1 %v58_v27  ;;  %518 = vmatprep.subr.mxu0 %v41_v28  ;;  %v15_v54 = vld [vmem:[%s1101_s0] sm:$0xff]  ;;  %v36_v55 = vld [vmem:[%s1102_s1 + $0x98] sm:$0xff]  ;;  %v35_v60 = vld [vmem:[%s1102_s1 + $0x90] sm:$0xff] }
  0x12   :  { %553 = vmatprep.subr.mxu1 %v73_v29  ;;  %519 = vmatpush3.msra.mxu0 %v25_v33  ;;  %v68_v56 = vld [vmem:[%s1102_s1 + $0x198] sm:$0xff]  ;;  %v154_v57 = vcombine.high %v15_v54, %v15_v54  ;;  %v67_v61 = vld [vmem:[%s1102_s1 + $0x190] sm:$0xff]  ;;  %v161_v62 = vrot.slane %v15_v54, %v834_v51  ;;  %v34_v1 = vld [vmem:[%s1102_s1 + $0x88] sm:$0xff] }
  0x13   :  { %554 = vmatpush3.msra.mxu1 %v57_v34  ;;  %520 = vmatprep.subr.mxu0 %v40_v35  ;;  %v20_v58 = vld [vmem:[%s1102_s1 + $0x18] sm:$0xff]  ;;  %v19_v63 = vld [vmem:[%s1102_s1 + $0x10] sm:$0xff]  ;;  %v66_v2 = vld [vmem:[%s1102_s1 + $0x188] sm:$0xff] }
  0x14   :  { %555 = vmatprep.subr.mxu1 %v72_v36  ;;  %521 = vmatpush3.msra.mxu0 %v24_v37  ;;  %v52_v59 = vld [vmem:[%s1102_s1 + $0x118] sm:$0xff]  ;;  %v51_v0 = vld [vmem:[%s1102_s1 + $0x110] sm:$0xff]  ;;  %v168_v3 = vrot.slane %v154_v57, %v834_v51  ;;  %v18_v4 = vld [vmem:[%s1102_s1 + $0x8] sm:$0xff]  ;;  %v169_v8 = vcombine.high %v161_v62, %v161_v62 }
  0x15   :  { %556 = vmatpush3.msra.mxu1 %v56_v38  ;;  %522 = vmatprep.subr.mxu0 %v39_v39  ;;  %v50_v5 = vld [vmem:[%s1102_s1 + $0x108] sm:$0xff]  ;;  %v33_v6 = vld [vmem:[%s1102_s1 + $0x80] sm:$0xff]  ;;  %v112_v12 = vld [vmem:[%s1102_s1 + $0x2f8] sm:$0xff] }
  0x16   :  { %557 = vmatprep.subr.mxu1 %v71_v40  ;;  %523 = vmatpush3.msra.mxu0 %v23_v43  ;;  %v65_v7 = vld [vmem:[%s1102_s1 + $0x180] sm:$0xff]  ;;  %v170_v11 = vcombine.high %v168_v3, %v168_v3  ;;  %v144_v13 = vld [vmem:[%s1102_s1 + $0x3f8] sm:$0xff]  ;;  %v111_v16 = vld [vmem:[%s1102_s1 + $0x2f0] sm:$0xff] }
  0x17   :  { %558 = vmatpush3.msra.mxu1 %v55_v44  ;;  %524 = vmatprep.subr.mxu0 %v38_v45  ;;  %v17_v9 = vld [vmem:[%s1102_s1] sm:$0xff]  ;;  %v96_v14 = vld [vmem:[%s1102_s1 + $0x278] sm:$0xff]  ;;  %v143_v17 = vld [vmem:[%s1102_s1 + $0x3f0] sm:$0xff] }
  0x18   :  { %559 = vmatprep.subr.mxu1 %v70_v46  ;;  %525 = vmatpush3.msra.mxu0 %v22_v47  ;;  %v49_v10 = vld [vmem:[%s1102_s1 + $0x100] sm:$0xff]  ;;  %v128_v15 = vld [vmem:[%s1102_s1 + $0x378] sm:$0xff]  ;;  %v95_v18 = vld [vmem:[%s1102_s1 + $0x270] sm:$0xff] }
  0x19   :  { %560 = vmatpush3.msra.mxu1 %v54_v48  ;;  %526 = vmatprep.subr.mxu0 %v37_v49  ;;  %v127_v19 = vld [vmem:[%s1102_s1 + $0x370] sm:$0xff]  ;;  %v110_v20 = vld [vmem:[%s1102_s1 + $0x2e8] sm:$0xff]  ;;  %v109_v24 = vld [vmem:[%s1102_s1 + $0x2e0] sm:$0xff] }
  0x1a   :  { %561 = vmatprep.subr.mxu1 %v69_v50  ;;  %527 = vmatpush3.msra.mxu0 %v21_v52  ;;  %v142_v21 = vld [vmem:[%s1102_s1 + $0x3e8] sm:$0xff]  ;;  %v141_v25 = vld [vmem:[%s1102_s1 + $0x3e0] sm:$0xff]  ;;  %v108_v28 = vld [vmem:[%s1102_s1 + $0x2d8] sm:$0xff] }
  0x1b   :  { %562 = vmatpush3.msra.mxu1 %v53_v53  ;;  %528 = vmatprep.subr.mxu0 %v36_v55  ;;  %v94_v22 = vld [vmem:[%s1102_s1 + $0x268] sm:$0xff]  ;;  %v93_v26 = vld [vmem:[%s1102_s1 + $0x260] sm:$0xff]  ;;  %v140_v29 = vld [vmem:[%s1102_s1 + $0x3d8] sm:$0xff] }
  0x1c   :  { %563 = vmatprep.subr.mxu1 %v68_v56  ;;  %529 = vmatpush3.msra.mxu0 %v20_v58  ;;  %v126_v23 = vld [vmem:[%s1102_s1 + $0x368] sm:$0xff]  ;;  %v125_v27 = vld [vmem:[%s1102_s1 + $0x360] sm:$0xff]  ;;  %v92_v30 = vld [vmem:[%s1102_s1 + $0x258] sm:$0xff] }
  0x1d   :  { %564 = vmatpush3.msra.mxu1 %v52_v59  ;;  %530 = vmatprep.subr.mxu0 %v35_v60  ;;  %v124_v31 = vld [vmem:[%s1102_s1 + $0x358] sm:$0xff]  ;;  %v107_v32 = vld [vmem:[%s1102_s1 + $0x2d0] sm:$0xff] }
  0x1e   :  { %565 = vmatprep.subr.mxu1 %v67_v61  ;;  %531 = vmatpush3.msra.mxu0 %v19_v63  ;;  %v139_v33 = vld [vmem:[%s1102_s1 + $0x3d0] sm:$0xff] }
  0x1f   :  { %566 = vmatpush3.msra.mxu1 %v51_v0  ;;  %532 = vmatprep.subr.mxu0 %v34_v1  ;;  %v91_v34 = vld [vmem:[%s1102_s1 + $0x250] sm:$0xff] }
  0x20   :  { %567 = vmatprep.subr.mxu1 %v66_v2  ;;  %533 = vmatpush3.msra.mxu0 %v18_v4  ;;  %v123_v35 = vld [vmem:[%s1102_s1 + $0x350] sm:$0xff] }
  0x21   :  { %568 = vmatpush3.msra.mxu1 %v50_v5  ;;  %534 = vmatprep.subr.mxu0 %v33_v6 }
  0x22   :  { %569 = vmatprep.subr.mxu1 %v65_v7  ;;  %535 = vmatpush3.msra.mxu0 %v17_v9 }
  0x23   :  { %260 = vmatprep.mubr.f32.mxu0 %v169_v8  ;;  %570 = vmatpush3.msra.mxu1 %v49_v10 }
  0x24   :  { %261 = vmatmul.mubr.f32.vlgmr.msra.gmra.mxu0 %v161_v62  ;;  %330 = vmatprep.mubr.f32.mxu1 %v170_v11 }
  0x25   :  { %574 = vmatprep.subr.mxu0 %v112_v12  ;;  %609 = vmatprep.subr.mxu1 %v144_v13 }
  0x26   :  { %331 = vmatmul.mubr.f32.vlgmr.msra.gmra.mxu1 %v168_v3  ;;  %575 = vmatpush3.msra.mxu0 %v96_v14 }
  0x27   :  { %610 = vmatpush3.msra.mxu1 %v128_v15  ;;  %576 = vmatprep.subr.mxu0 %v111_v16 }
  0x28   :  { %611 = vmatprep.subr.mxu1 %v143_v17  ;;  %577 = vmatpush3.msra.mxu0 %v95_v18 }
  0x29   :  { %612 = vmatpush3.msra.mxu1 %v127_v19  ;;  %578 = vmatprep.subr.mxu0 %v110_v20 }
  0x2a   :  { %613 = vmatprep.subr.mxu1 %v142_v21  ;;  %579 = vmatpush3.msra.mxu0 %v94_v22 }
  0x2b   :  { %614 = vmatpush3.msra.mxu1 %v126_v23  ;;  %580 = vmatprep.subr.mxu0 %v109_v24 }
  0x2c   :  { %615 = vmatprep.subr.mxu1 %v141_v25  ;;  %581 = vmatpush3.msra.mxu0 %v93_v26 }
  0x2d   :  { %616 = vmatpush3.msra.mxu1 %v125_v27  ;;  %582 = vmatprep.subr.mxu0 %v108_v28 }
  0x2e   :  { %617 = vmatprep.subr.mxu1 %v140_v29 }
  0x2f   :  { %8 = vsyncpa [#allocation3], 0  ;;  %583 = vmatpush3.msra.mxu0 %v92_v30  ;;  %618 = vmatpush3.msra.mxu1 %v124_v31  ;;  %v106_v36 = vld [vmem:[%s1102_s1 + $0x2c8] sm:$0xff]  ;;  %v105_v40 = vld [vmem:[%s1102_s1 + $0x2c0] sm:$0xff]  ;;  %vm476_vm0 = vcmask 25600  }
  0x30   :  { %v138_v37 = vld [vmem:[%s1102_s1 + $0x3c8] sm:$0xff]  ;;  %584 = vmatprep.subr.mxu0 %v107_v32  ;;  %619 = vmatprep.subr.mxu1 %v139_v33  ;;  %v137_v41 = vld [vmem:[%s1102_s1 + $0x3c0] sm:$0xff]  ;;  %v104_v44 = vld [vmem:[%s1102_s1 + $0x2b8] sm:$0xff] }
  0x31   :  { %v90_v38 = vld [vmem:[%s1102_s1 + $0x248] sm:$0xff]  ;;  %585 = vmatpush3.msra.mxu0 %v91_v34  ;;  %620 = vmatpush3.msra.mxu1 %v123_v35  ;;  %v89_v42 = vld [vmem:[%s1102_s1 + $0x240] sm:$0xff]  ;;  %v136_v45 = vld [vmem:[%s1102_s1 + $0x3b8] sm:$0xff] }
  0x32   :  { %v122_v39 = vld [vmem:[%s1102_s1 + $0x348] sm:$0xff]  ;;  %586 = vmatprep.subr.mxu0 %v106_v36  ;;  %621 = vmatprep.subr.mxu1 %v138_v37  ;;  %v121_v43 = vld [vmem:[%s1102_s1 + $0x340] sm:$0xff]  ;;  %v88_v46 = vld [vmem:[%s1102_s1 + $0x238] sm:$0xff] }
  0x33   :  { %587 = vmatpush3.msra.mxu0 %v90_v38  ;;  %622 = vmatpush3.msra.mxu1 %v122_v39  ;;  %v120_v47 = vld [vmem:[%s1102_s1 + $0x338] sm:$0xff]  ;;  %v103_v48 = vld [vmem:[%s1102_s1 + $0x2b0] sm:$0xff]  ;;  %v102_v53 = vld [vmem:[%s1102_s1 + $0x2a8] sm:$0xff] }
  0x34   :  { %588 = vmatprep.subr.mxu0 %v105_v40  ;;  %623 = vmatprep.subr.mxu1 %v137_v41  ;;  %v135_v49 = vld [vmem:[%s1102_s1 + $0x3b0] sm:$0xff]  ;;  %v134_v54 = vld [vmem:[%s1102_s1 + $0x3a8] sm:$0xff]  ;;  %v101_v58 = vld [vmem:[%s1102_s1 + $0x2a0] sm:$0xff] }
  0x35   :  { %589 = vmatpush3.msra.mxu0 %v89_v42  ;;  %624 = vmatpush3.msra.mxu1 %v121_v43  ;;  %v87_v50 = vld [vmem:[%s1102_s1 + $0x230] sm:$0xff]  ;;  %v16_v55 = vld [vmem:[%s1101_s0 + $0x8] sm:$0xff]  ;;  %v133_v59 = vld [vmem:[%s1102_s1 + $0x3a0] sm:$0xff] }
  0x36   :  { %590 = vmatprep.subr.mxu0 %v104_v44  ;;  %625 = vmatprep.subr.mxu1 %v136_v45  ;;  %v119_v52 = vld [vmem:[%s1102_s1 + $0x330] sm:$0xff]  ;;  %v86_v56 = vld [vmem:[%s1102_s1 + $0x228] sm:$0xff]  ;;  %v85_v60 = vld [vmem:[%s1102_s1 + $0x220] sm:$0xff]  ;;  %v171_v62 = vcombine.high %v16_v55, %v16_v55  ;;  %v178_v5 = vrot.slane %v16_v55, %v834_v51 }
  0x37   :  { %591 = vmatpush3.msra.mxu0 %v88_v46  ;;  %626 = vmatpush3.msra.mxu1 %v120_v47  ;;  %v118_v57 = vld [vmem:[%s1102_s1 + $0x328] sm:$0xff]  ;;  %v117_v61 = vld [vmem:[%s1102_s1 + $0x320] sm:$0xff]  ;;  %v100_v63 = vld [vmem:[%s1102_s1 + $0x298] sm:$0xff] }
  0x38   :  { %592 = vmatprep.subr.mxu0 %v103_v48  ;;  %627 = vmatprep.subr.mxu1 %v135_v49  ;;  %v132_v0 = vld [vmem:[%s1102_s1 + $0x398] sm:$0xff]  ;;  %v99_v3 = vld [vmem:[%s1102_s1 + $0x290] sm:$0xff]  ;;  %v185_v8 = vrot.slane %v171_v62, %v834_v51  ;;  %v98_v9 = vld [vmem:[%s1102_s1 + $0x288] sm:$0xff]  ;;  %v186_v14 = vcombine.high %v178_v5, %v178_v5 }
  0x39   :  { %593 = vmatpush3.msra.mxu0 %v87_v50  ;;  %628 = vmatpush3.msra.mxu1 %v119_v52  ;;  %v84_v1 = vld [vmem:[%s1102_s1 + $0x218] sm:$0xff]  ;;  %v131_v4 = vld [vmem:[%s1102_s1 + $0x390] sm:$0xff]  ;;  %v130_v10 = vld [vmem:[%s1102_s1 + $0x388] sm:$0xff] }
  0x3a   :  { %594 = vmatprep.subr.mxu0 %v102_v53  ;;  %629 = vmatprep.subr.mxu1 %v134_v54  ;;  %v116_v2 = vld [vmem:[%s1102_s1 + $0x318] sm:$0xff]  ;;  %v83_v6 = vld [vmem:[%s1102_s1 + $0x210] sm:$0xff]  ;;  %v82_v11 = vld [vmem:[%s1102_s1 + $0x208] sm:$0xff]  ;;  %v187_v16 = vcombine.high %v185_v8, %v185_v8 }
  0x3b   :  { %595 = vmatpush3.msra.mxu0 %v86_v56  ;;  %630 = vmatpush3.msra.mxu1 %v118_v57  ;;  %v115_v7 = vld [vmem:[%s1102_s1 + $0x310] sm:$0xff]  ;;  %v114_v51 = vld [vmem:[%s1102_s1 + $0x308] sm:$0xff]  ;;  %v97_v12 = vld [vmem:[%s1102_s1 + $0x280] sm:$0xff] }
  0x3c   :  { %596 = vmatprep.subr.mxu0 %v101_v58  ;;  %631 = vmatprep.subr.mxu1 %v133_v59  ;;  %v129_v13 = vld [vmem:[%s1102_s1 + $0x380] sm:$0xff] }
  0x3d   :  { %597 = vmatpush3.msra.mxu0 %v85_v60  ;;  %632 = vmatpush3.msra.mxu1 %v117_v61  ;;  %v81_v15 = vld [vmem:[%s1102_s1 + $0x200] sm:$0xff] }
  0x3e   :  { %598 = vmatprep.subr.mxu0 %v100_v63  ;;  %633 = vmatprep.subr.mxu1 %v132_v0  ;;  %v113_v17 = vld [vmem:[%s1102_s1 + $0x300] sm:$0xff]  ;;  %s675_s1 = smov [#allocation2]  }
  0x3f   :  { %599 = vmatpush3.msra.mxu0 %v84_v1  ;;  %634 = vmatpush3.msra.mxu1 %v116_v2  ;;  %v503_v22 = vld [vmem:[%s1103_s2] ss:$0 sm:$0xff]  ;;  %s495_s2 = sshll.u32 %s675_s1, 4  ;;  %s496_s2 = int_to_ptr.vmem [resolvable:$true] %s495_s2 }
  0x40   :  { %600 = vmatprep.subr.mxu0 %v99_v3  ;;  %635 = vmatprep.subr.mxu1 %v131_v4  ;;  %s652_s29 = scalar_lea.vmem %s496_s2, 32  ;;  %p657_p1 = scmp.lt.s32.totalorder %s496_s2, %s496_s2 }
  0x41   :  { %601 = vmatpush3.msra.mxu0 %v83_v6  ;;  %636 = vmatpush3.msra.mxu1 %v115_v7  ;;  %p653_p0 = scmp.ne.s32.totalorder %s496_s2, %s652_s29  ;;  %p658_p2 = scmp.lt.s32.totalorder %s652_s29, %s652_s29 }
  0x42   :  { %602 = vmatprep.subr.mxu0 %v98_v9  ;;  %637 = vmatprep.subr.mxu1 %v130_v10 }
  0x43   :  { %603 = vmatpush3.msra.mxu0 %v82_v11  ;;  %638 = vmatpush3.msra.mxu1 %v114_v51  ;;  %p659_p3 = por %p658_p2, %p657_p1 }
  0x44   :  { %604 = vmatprep.subr.mxu0 %v97_v12  ;;  %639 = vmatprep.subr.mxu1 %v129_v13 }
  0x45   :  { %605 = vmatpush3.msra.mxu0 %v81_v15  ;;  %400 = vmatprep.mubr.f32.mxu0 %v186_v14  ;;  %p660_p4 = pnand %p659_p3, %p653_p0 }
  0x46   :  { %640 = vmatpush3.msra.mxu1 %v113_v17  ;;  %470 = vmatprep.mubr.f32.mxu1 %v187_v16 }
  0x47   :  { %401 = vmatmul.mubr.f32.vlgmr.msra.gmra.mxu0 %v178_v5  ;;  %471 = vmatmul.mubr.f32.vlgmr.msra.gmra.mxu1 %v185_v8 }
  0xe4   :  { %v536_v18 = vpop.f32.mrf.mxu0 }
  0xe6   :  { %v571_v19 = vpop.f32.mrf.mxu1  ;;  %v537_v20 = vpop.f32.mrf.mxu0 }
  0xe7   :  { %v538_v21 = vadd.f32 %v537_v20, %v536_v18 }
  0xe8   :  { %v572_v23 = vpop.f32.mrf.mxu1 }
  0xe9   :  { %v263_v24 = vadd.f32 %v538_v21, %v503_v22  ;;  %v573_v25 = vadd.f32 %v572_v23, %v571_v19 }
  0xeb   :  { %v333_v30 = vadd.f32 %v573_v25, %v263_v24 }
 0x107   :  { %v606_v26 = vpop.f32.mrf.mxu0  ;;  %v641_v27 = vpop.f32.mrf.mxu1 }
 0x109   :  { %v607_v28 = vpop.f32.mrf.mxu0  ;;  %v642_v29 = vpop.f32.mrf.mxu1 }
 0x10a   :  { %v608_v31 = vadd.f32 %v607_v28, %v606_v26  ;;  %v643_v33 = vadd.f32 %v642_v29, %v641_v27 }
 0x10c   :  { %v403_v32 = vadd.f32 %v608_v31, %v333_v30 }
 0x10e   :  { %v473_v34 = vadd.f32 %v643_v33, %v403_v32 }
 0x110   :  { %v477_v35 = vsel %vm476_vm0, %v473_v34, -inf }
 0x111   :  { %478 = vmax.xlane.f32.xlu0 %v477_v35 }
 0x19a   :  { %v479_v36 = vpop.xlane.xlu0 %478 }
 0x19b   :  { %v480_v37 = vsub.f32 %v473_v34, %v479_v36 }
 0x19d   :  { %v481_v38 = vmul.f32 1.442695, %v480_v37 }
 0x19f   :  { %648 = vpow2.f32 %v481_v38 }
 0x1ac   :  { %v649_v39 = vpop.eup %648 }
 0x1ad   :  { %v483_v40 = vsel %vm476_vm0, %v649_v39, 0.0 }
 0x1ae   :  { %484 = vadd.xlane.f32.xlu0 %v483_v40 }
 0x237   :  { %v485_v41 = vpop.xlane.xlu0 %484 }
 0x238   :  { %650 = vrcp.f32 %v485_v41 }
 0x245   :  { %v651_v42 = vpop.eup %650 }
 0x246   :  { %v487_v43 = vmul.f32 %v651_v42, %v649_v39 }
 0x248   :  { %488 = vst.msk [vmem:[#allocation2] sm:$0x3] %vm476_vm0, %v487_v43 }
 0x249   :  { %663 = shalt.err (!%p660_p4)
}
 0x24a   :  { %498 = dma.vmem_to_hbm [thread:$0]  %s496_s2, 32, %s1104_s3, [#allocation3]  }
 0x24b   :  { %672 = dma.done.wait [#allocation3], 32  }
 0x24c   :  { %673 = vsyncadd [#allocation3], 4294967264 }
 0x24d   :  { %502 = vsyncpa [#allocation3], 1 }

</bundles_post_ra>
